<compile_context>
chip_gen: v5e
topology: v5e:2x2
jax: 0.10.0
libtpu: 0.0.40
codegen_flags: <defaults>
</compile_context>

<pallas_src>
import functools
import math

import jax
import jax.numpy as jnp
from jax.experimental import pallas as pl
from jax.experimental.pallas import tpu as pltpu

# ------------------------- loss hyper-parameters ----------------------------
EPS = 1e-6
BG_WEIGHT = 1.0
GMM_WEIGHT = 1.0
MIN_SIGMA = 0.01
MAX_SIGMA = 10.0
USE_LOG_SIGMA = True  # default of GaussianMMLoss
HALF_LOG_2PI = 0.5 * math.log(2.0 * math.pi)
LOG_MIN_SIGMA = math.log(MIN_SIGMA)
LOG_MAX_SIGMA = math.log(MAX_SIGMA)

LANE = 128


# ------------------------------ Pallas kernel -------------------------------
def _gmm_loss_kernel(out_lo_ref, out_hi_ref, tgt_lo_ref, tgt_bg_ref,
                     loss_ref, acc_ref, *,
                     inv_count, use_log_sigma, needs_mask, hw_valid,
                     chunk_pixels, chunks_per_split):
    """One (spatial-split, spatial-chunk) grid step of the GaussianMM loss.

    out_lo_ref : (B, 5, S_t, 128)  prediction channels 0-4 (p, mu)
    out_hi_ref : (B, 5, S_t, 128)  prediction channels 5-9 (sigma_raw, bg)
    tgt_lo_ref : (B, 5, S_t, 128)  target channels 0-4 (p, mu)
    tgt_bg_ref : (B, 1, S_t, 128)  target channel 9 (bg)   [ch 5-8 never DMA'd]
    loss_ref   : (1, 1) f32 SMEM   per-split mean-loss output (finalize only)
    acc_ref    : (B, S_t, 128) f32 VMEM accumulator (VPU adds per chunk)
    """
    j = pl.program_id(1)

    @pl.when(j == 0)
    def _init():
        acc_ref[...] = jnp.zeros_like(acc_ref)

    # ---- channel groups: leading-dim slices, cast to f32 per group ----
    lo = out_lo_ref[...]
    hi = out_hi_ref[...]
    tlo = tgt_lo_ref[...]

    p = lo[:, 0].astype(jnp.float32)           # (B, S_t, 128) detection logits
    mu = lo[:, 1:5].astype(jnp.float32)        # (B, 4, S_t, 128)
    sig_raw = hi[:, 0:4].astype(jnp.float32)   # (B, 4, S_t, 128)
    bg = hi[:, 4].astype(jnp.float32)          # (B, S_t, 128)

    t_p = tlo[:, 0].astype(jnp.float32)
    t_mu = tlo[:, 1:5].astype(jnp.float32)
    t_bg = tgt_bg_ref[...][:, 0].astype(jnp.float32)

    # ---- sigma parametrization (matches _parse_output exactly) ----
    if use_log_sigma:
        # clamp(exp(x), MIN, MAX) == exp(clip(x, logMIN, logMAX)): avoids inf.
        sig = jnp.exp(jnp.clip(sig_raw, LOG_MIN_SIGMA, LOG_MAX_SIGMA))
    else:
        sig = jnp.clip(jax.nn.softplus(sig_raw) + MIN_SIGMA, MIN_SIGMA, MAX_SIGMA)
    inv_sig_eps = 1.0 / (sig + EPS)
    log_sig_eps = jnp.log(sig + EPS)

    # ---- detection loss: PyTorch BCE with -100 log clamp ----
    p_sig = 1.0 / (1.0 + jnp.exp(-p))
    detection_loss = -(t_p * jnp.maximum(jnp.log(p_sig), -100.0)
                       + (1.0 - t_p) * jnp.maximum(jnp.log(1.0 - p_sig), -100.0))

    # ---- Gaussian NLL regression loss (fg-masked) ----
    fg_mask = (t_p > 0.5).astype(jnp.float32)
    nd = (mu - t_mu) * inv_sig_eps
    nll = jnp.sum(0.5 * nd * nd + log_sig_eps + HALF_LOG_2PI, axis=1)  # (B,S_t,128)
    # "if fg_mask.sum() > 0" branch is equivalent: nll is finite, so nll*0 == 0.
    regression_loss = nll * fg_mask

    # ---- background MSE + total ----
    bg_loss = (bg - t_bg) ** 2
    total = GMM_WEIGHT * (detection_loss + regression_loss) + BG_WEIGHT * bg_loss

    if needs_mask:  # zero out padded tail pixels (static flag)
        base = (pl.program_id(0) * chunks_per_split + j) * chunk_pixels
        s_t = total.shape[1]
        row = jax.lax.broadcasted_iota(jnp.int32, (s_t, LANE), 0)
        col = jax.lax.broadcasted_iota(jnp.int32, (s_t, LANE), 1)
        pos = base + row * LANE + col
        total = jnp.where((pos < hw_valid)[None], total, 0.0)

    # per-chunk accumulation: pure VPU, no XLU reduce, no SMEM scalar RMW.
    acc_ref[...] += total

    @pl.when(j == pl.num_programs(1) - 1)
    def _finalize():
        loss_ref[0, 0] = jnp.sum(acc_ref[...]) * jnp.float32(inv_count)


# ------------------------------ planning helpers -----------------------------
def _vmem_limit_bytes():
    """Generation-aware scoped-VMEM limit (v5e/v6e: 64 MiB, v7x: ~44 MiB)."""
    cap = 128 * 1024 * 1024
    try:
        info = pltpu.get_tpu_info()
        cap = int(getattr(info, "vmem_capacity_bytes", cap))
    except Exception:
        pass
    return int(min(64 * 1024 * 1024, cap * 7 // 10))


def _plan_tiling(hw, bytes_per_srow, max_step_bytes):
    """Return (hw_pad, s_tile) with hw_pad % 128 == 0 and s_tile a legal
    (multiple-of-8 or full-extent) divisor of S = hw_pad // 128."""
    hw_pad = ((hw + LANE - 1) // LANE) * LANE
    S = hw_pad // LANE

    best = 0
    for t in range(8, S + 1, 8):
        if S % t == 0 and t * bytes_per_srow <= max_step_bytes:
            best = t
    if best:
        return hw_pad, best
    if S * bytes_per_srow <= max_step_bytes:
        return hw_pad, S                    # whole extent in a single chunk

    # No fitting multiple-of-8 divisor and full-S too big: pad S to a multiple
    # of 8 so small tiles become legal (rare; HW = 128 * large-prime).
    hw_pad = ((hw + 1023) // 1024) * 1024
    S = hw_pad // LANE
    best = 8
    for t in range(8, S + 1, 8):
        if S % t == 0 and t * bytes_per_srow <= max_step_bytes:
            best = t
    return hw_pad, best


# --------------------------- single-mode wrapper -----------------------------
def gaussian_mm_mode_loss(output, target, *, use_log_sigma=USE_LOG_SIGMA):
    """GaussianMMLoss 'mean_total_loss' for one mode (output/target: B,10,H,W)."""
    B, C, H, W = output.shape
    assert C == 10, "GaussianMMLoss expects 10-channel input"
    assert target.shape == output.shape
    HW = H * W

    out_isz = output.dtype.itemsize
    tgt_isz = target.dtype.itemsize
    bytes_per_srow = B * LANE * (10 * out_isz + 6 * tgt_isz)

    vmem_limit = _vmem_limit_bytes()
    max_step_bytes = min(12 * 1024 * 1024, vmem_limit // 5)

    hw_pad, s_tile = _plan_tiling(HW, bytes_per_srow, max_step_bytes)
    S = hw_pad // LANE
    n_chunks = S // s_tile
    P = 2 if (n_chunks >= 2 and n_chunks % 2 == 0) else 1  # v7x megacore split
    J = n_chunks // P
    needs_mask = hw_pad != HW

    # contiguous reshape only (plus zero-pad if HW is not lane-aligned)
    out3 = output.reshape(B, C, HW)
    tgt3 = target.reshape(B, C, HW)
    if needs_mask:
        pad = hw_pad - HW
        out3 = jnp.pad(out3, ((0, 0), (0, 0), (0, pad)))
        tgt3 = jnp.pad(tgt3, ((0, 0), (0, 0), (0, pad)))
    out4 = out3.reshape(B, C, S, LANE)
    tgt4 = tgt3.reshape(B, C, S, LANE)

    elems = B * HW
    cost = pl.CostEstimate(
        flops=int(elems * 60),
        transcendentals=int(elems * 14),
        bytes_accessed=int(B * hw_pad * (10 * out_isz + 6 * tgt_isz) + P * 4),
    )

    kern = functools.partial(
        _gmm_loss_kernel,
        inv_count=1.0 / float(B * HW),
        use_log_sigma=use_log_sigma,
        needs_mask=needs_mask,
        hw_valid=HW,
        chunk_pixels=s_tile * LANE,
        chunks_per_split=J,
    )

    in_specs = [
        # prediction channels 0-4 and 5-9 (two aligned 5-channel blocks)
        pl.BlockSpec((B, 5, s_tile, LANE), lambda p, j: (0, 0, p * J + j, 0)),
        pl.BlockSpec((B, 5, s_tile, LANE), lambda p, j: (0, 1, p * J + j, 0)),
        # target channels 0-4 and channel 9 (sigma channels 5-8 never read)
        pl.BlockSpec((B, 5, s_tile, LANE), lambda p, j: (0, 0, p * J + j, 0)),
        pl.BlockSpec((B, 1, s_tile, LANE), lambda p, j: (0, 9, p * J + j, 0)),
    ]
    out_spec = pl.BlockSpec((1, 1), lambda p, j: (p, 0),
                            memory_space=pltpu.MemorySpace.SMEM)

    partials = pl.pallas_call(
        kern,
        out_shape=jax.ShapeDtypeStruct((P, 1), jnp.float32),
        grid_spec=pltpu.PrefetchScalarGridSpec(
            num_scalar_prefetch=0,
            grid=(P, J),
            in_specs=in_specs,
            out_specs=out_spec,
            scratch_shapes=[pltpu.VMEM((B, s_tile, LANE), jnp.float32)],
        ),
        compiler_params=pltpu.CompilerParams(
            dimension_semantics=("parallel", "arbitrary"),
            vmem_limit_bytes=vmem_limit,
        ),
        cost_estimate=cost,
    )(out4, out4, tgt4, tgt4)

    return jnp.sum(partials)


# --------------------------- multi-modal wrapper ------------------------------
def multimodal_gaussian_mm_loss(outputs, targets, mode_weights):
    """MultiModalGaussianMMLoss.forward (per-mode pallas_call, no stacking)."""
    num_modes = len(outputs)
    assert len(targets) == num_modes and mode_weights.shape[0] == num_modes

    w = mode_weights.astype(jnp.float32)
    result = {}
    total = jnp.float32(0.0)
    for i in range(num_modes):
        mode_loss = gaussian_mm_mode_loss(outputs[i], targets[i])
        result[f"mode_{i}_loss"] = mode_loss
        total = total + w[i] * mode_loss
    result["total_loss"] = total
    return result


# ---------------------------- pure-JAX reference ----------------------------
def _reference_mode_loss(output, target):
    """Mirrors the PyTorch GaussianMMLoss math exactly (mean_total_loss)."""
    output = output.astype(jnp.float32)
    target = target.astype(jnp.float32)
    p, mu, sig_raw, bg = output[:, 0:1], output[:, 1:5], output[:, 5:9], output[:, 9:10]
    if USE_LOG_SIGMA:
        sig = jnp.clip(jnp.exp(sig_raw), MIN_SIGMA, MAX_SIGMA)
    else:
        sig = jnp.clip(jax.nn.softplus(sig_raw) + MIN_SIGMA, MIN_SIGMA, MAX_SIGMA)
    tp, tmu, tbg = target[:, 0:1], target[:, 1:5], target[:, 9:10]
    fg = (tp > 0.5).astype(jnp.float32)
    ps = jax.nn.sigmoid(p)
    det = -(tp * jnp.maximum(jnp.log(ps), -100.0)
            + (1.0 - tp) * jnp.maximum(jnp.log(1.0 - ps), -100.0))
    nd = (mu - tmu) / (sig + EPS)
    nll = jnp.sum(0.5 * nd * nd + jnp.log(sig + EPS) + HALF_LOG_2PI,
                  axis=1, keepdims=True)
    total = GMM_WEIGHT * (det + nll * fg) + BG_WEIGHT * (bg - tbg) ** 2
    return jnp.mean(total)


# ---------------------------------- driver ----------------------------------
if __name__ == "__main__":
    key = jax.random.PRNGKey(0)
    B, C, H, W = 2, 10, 16, 16
    NUM_MODES = 2

    # deterministic "parameters": uniform mode weights (the module's buffer)
    mode_weights = jnp.ones((NUM_MODES,), jnp.float32) / NUM_MODES

    outputs, targets = [], []
    for m in range(NUM_MODES):
        key, k1, k2, k3, k4 = jax.random.split(key, 5)
        out = jax.random.normal(k1, (B, C, H, W), jnp.float32)
        # 10-channel target: ch0 binary occupancy, ch1-4 params, ch5-8 sigmas, ch9 bg
        tgt_p = (jax.random.uniform(k2, (B, 1, H, W)) > 0.9).astype(jnp.float32)
        tgt_rest = 0.1 * jax.random.normal(k3, (B, 8, H, W), jnp.float32)
        tgt_bg = 0.05 * jax.random.normal(k4, (B, 1, H, W), jnp.float32)
        tgt = jnp.concatenate([tgt_p, tgt_rest, tgt_bg], axis=1)  # (B,10,H,W)
        outputs.append(out)
        targets.append(tgt)

    result = multimodal_gaussian_mm_loss(outputs, targets, mode_weights)
    result = jax.tree_util.tree_map(jax.block_until_ready, result)

    # correctness check against pure-JAX reference (PyTorch semantics)
    ref_total = jnp.float32(0.0)
    for i in range(NUM_MODES):
        ref_mode = _reference_mode_loss(outputs[i], targets[i])
        ref_total = ref_total + mode_weights[i] * ref_mode
        assert jnp.allclose(result[f"mode_{i}_loss"], ref_mode, rtol=1e-3, atol=1e-3), (
            result[f"mode_{i}_loss"], ref_mode)
    assert jnp.allclose(result["total_loss"], ref_total, rtol=1e-3, atol=1e-3), (
        result["total_loss"], ref_total)

    print("KERNEL_OK")
</pallas_src>

<mosaic_0001>
module attributes {stable_mosaic.version = 11 : i64} {
  func.func @_gmm_loss_kernel(%arg0: i32, %arg1: i32, %arg2: memref<2x5x2x128xf32, #tpu.memory_space<vmem>>, %arg3: memref<2x5x2x128xf32, #tpu.memory_space<vmem>>, %arg4: memref<2x5x2x128xf32, #tpu.memory_space<vmem>>, %arg5: memref<2x1x2x128xf32, #tpu.memory_space<vmem>>, %arg6: memref<1x1xf32, #tpu.memory_space<smem>>, %arg7: memref<2x2x128xf32, #tpu.memory_space<vmem>>) attributes {dimension_semantics = [#tpu.dimension_semantics<parallel>, #tpu.dimension_semantics<arbitrary>], iteration_bounds = array<i64: 1, 1>, scalar_prefetch = 0 : i64, scratch_operands = 1 : i64, tpu.core_type = #tpu.core_type<tc>, window_params = [{transform_indices = @transform_0, window_bounds = array<i64: 2, 5, 2, 128>}, {transform_indices = @transform_1, window_bounds = array<i64: 2, 5, 2, 128>}, {transform_indices = @transform_2, window_bounds = array<i64: 2, 5, 2, 128>}, {transform_indices = @transform_3, window_bounds = array<i64: 2, 1, 2, 128>}, {transform_indices = @transform_4, window_bounds = array<i64: 1, 1>}]} {
    %c0_i32 = arith.constant 0 : i32
    %0 = arith.cmpi eq, %arg1, %c0_i32 : i32
    %1 = arith.extui %0 : i1 to i32
    %c0_i32_0 = arith.constant 0 : i32
    %2 = arith.cmpi ne, %1, %c0_i32_0 : i32
    scf.if %2 {
      %cst_42 = arith.constant 0.000000e+00 : f32
      %79 = vector.broadcast %cst_42 : f32 to vector<2x2x128xf32>
      %c0_43 = arith.constant 0 : index
      %c0_44 = arith.constant 0 : index
      %c0_45 = arith.constant 0 : index
      %80 = vector.load %arg7[%c0_43, %c0_44, %c0_45] : memref<2x2x128xf32, #tpu.memory_space<vmem>>, vector<2x2x128xf32>
      tpu.vector_store %arg7[%c0_43, %c0_44, %c0_45], %79 {strides = array<i32>} : memref<2x2x128xf32, #tpu.memory_space<vmem>>, vector<2x2x128xf32>,
    } else {
    }
    %c0 = arith.constant 0 : index
    %c0_1 = arith.constant 0 : index
    %c0_2 = arith.constant 0 : index
    %c0_3 = arith.constant 0 : index
    %3 = vector.load %arg2[%c0, %c0_1, %c0_2, %c0_3] : memref<2x5x2x128xf32, #tpu.memory_space<vmem>>, vector<2x5x2x128xf32>
    %c0_4 = arith.constant 0 : index
    %c0_5 = arith.constant 0 : index
    %c0_6 = arith.constant 0 : index
    %c0_7 = arith.constant 0 : index
    %4 = vector.load %arg3[%c0_4, %c0_5, %c0_6, %c0_7] : memref<2x5x2x128xf32, #tpu.memory_space<vmem>>, vector<2x5x2x128xf32>
    %c0_8 = arith.constant 0 : index
    %c0_9 = arith.constant 0 : index
    %c0_10 = arith.constant 0 : index
    %c0_11 = arith.constant 0 : index
    %5 = vector.load %arg4[%c0_8, %c0_9, %c0_10, %c0_11] : memref<2x5x2x128xf32, #tpu.memory_space<vmem>>, vector<2x5x2x128xf32>
    %6 = vector.extract_strided_slice %3 {offsets = [0, 0, 0, 0], sizes = [2, 1, 2, 128], strides = [1, 1, 1, 1]} : vector<2x5x2x128xf32> to vector<2x1x2x128xf32>
    %7 = vector.shape_cast %6 : vector<2x1x2x128xf32> to vector<2x2x128xf32>
    %8 = vector.extract_strided_slice %3 {offsets = [0, 1, 0, 0], sizes = [2, 4, 2, 128], strides = [1, 1, 1, 1]} : vector<2x5x2x128xf32> to vector<2x4x2x128xf32>
    %9 = vector.extract_strided_slice %4 {offsets = [0, 0, 0, 0], sizes = [2, 4, 2, 128], strides = [1, 1, 1, 1]} : vector<2x5x2x128xf32> to vector<2x4x2x128xf32>
    %10 = vector.extract_strided_slice %4 {offsets = [0, 4, 0, 0], sizes = [2, 1, 2, 128], strides = [1, 1, 1, 1]} : vector<2x5x2x128xf32> to vector<2x1x2x128xf32>
    %11 = vector.shape_cast %10 : vector<2x1x2x128xf32> to vector<2x2x128xf32>
    %12 = vector.extract_strided_slice %5 {offsets = [0, 0, 0, 0], sizes = [2, 1, 2, 128], strides = [1, 1, 1, 1]} : vector<2x5x2x128xf32> to vector<2x1x2x128xf32>
    %13 = vector.shape_cast %12 : vector<2x1x2x128xf32> to vector<2x2x128xf32>
    %14 = vector.extract_strided_slice %5 {offsets = [0, 1, 0, 0], sizes = [2, 4, 2, 128], strides = [1, 1, 1, 1]} : vector<2x5x2x128xf32> to vector<2x4x2x128xf32>
    %c0_12 = arith.constant 0 : index
    %c0_13 = arith.constant 0 : index
    %c0_14 = arith.constant 0 : index
    %c0_15 = arith.constant 0 : index
    %15 = vector.load %arg5[%c0_12, %c0_13, %c0_14, %c0_15] : memref<2x1x2x128xf32, #tpu.memory_space<vmem>>, vector<2x1x2x128xf32>
    %16 = vector.shape_cast %15 : vector<2x1x2x128xf32> to vector<2x2x128xf32>
    %cst = arith.constant -4.60517025 : f32
    %cst_16 = arith.constant 2.30258512 : f32
    %17 = vector.broadcast %cst : f32 to vector<2x4x2x128xf32>
    %18 = arith.maximumf %17, %9 : vector<2x4x2x128xf32>
    %19 = vector.broadcast %cst_16 : f32 to vector<2x4x2x128xf32>
    %20 = arith.minimumf %19, %18 : vector<2x4x2x128xf32>
    %21 = math.exp %20 : vector<2x4x2x128xf32>
    %cst_17 = arith.constant 9.99999997E-7 : f32
    %22 = vector.broadcast %cst_17 : f32 to vector<2x4x2x128xf32>
    %23 = arith.addf %21, %22 : vector<2x4x2x128xf32>
    %cst_18 = arith.constant 1.000000e+00 : f32
    %24 = vector.broadcast %cst_18 : f32 to vector<2x4x2x128xf32>
    %25 = arith.divf %24, %23 : vector<2x4x2x128xf32>
    %cst_19 = arith.constant 9.99999997E-7 : f32
    %26 = vector.broadcast %cst_19 : f32 to vector<2x4x2x128xf32>
    %27 = arith.addf %21, %26 : vector<2x4x2x128xf32>
    %28 = math.log %27 : vector<2x4x2x128xf32>
    %cst_20 = arith.constant 0.000000e+00 : f32
    %29 = vector.broadcast %cst_20 : f32 to vector<2x2x128xf32>
    %30 = arith.subf %29, %7 : vector<2x2x128xf32>
    %31 = math.exp %30 : vector<2x2x128xf32>
    %cst_21 = arith.constant 1.000000e+00 : f32
    %32 = vector.broadcast %cst_21 : f32 to vector<2x2x128xf32>
    %33 = arith.addf %32, %31 : vector<2x2x128xf32>
    %cst_22 = arith.constant 1.000000e+00 : f32
    %34 = vector.broadcast %cst_22 : f32 to vector<2x2x128xf32>
    %35 = arith.divf %34, %33 : vector<2x2x128xf32>
    %36 = math.log %35 : vector<2x2x128xf32>
    %cst_23 = arith.constant -1.000000e+02 : f32
    %37 = vector.broadcast %cst_23 : f32 to vector<2x2x128xf32>
    %38 = arith.maximumf %36, %37 : vector<2x2x128xf32>
    %39 = arith.mulf %13, %38 : vector<2x2x128xf32>
    %cst_24 = arith.constant 1.000000e+00 : f32
    %40 = vector.broadcast %cst_24 : f32 to vector<2x2x128xf32>
    %41 = arith.subf %40, %13 : vector<2x2x128xf32>
    %cst_25 = arith.constant 1.000000e+00 : f32
    %42 = vector.broadcast %cst_25 : f32 to vector<2x2x128xf32>
    %43 = arith.subf %42, %35 : vector<2x2x128xf32>
    %44 = math.log %43 : vector<2x2x128xf32>
    %cst_26 = arith.constant -1.000000e+02 : f32
    %45 = vector.broadcast %cst_26 : f32 to vector<2x2x128xf32>
    %46 = arith.maximumf %44, %45 : vector<2x2x128xf32>
    %47 = arith.mulf %41, %46 : vector<2x2x128xf32>
    %48 = arith.addf %39, %47 : vector<2x2x128xf32>
    %cst_27 = arith.constant 0.000000e+00 : f32
    %49 = vector.broadcast %cst_27 : f32 to vector<2x2x128xf32>
    %50 = arith.subf %49, %48 : vector<2x2x128xf32>
    %cst_28 = arith.constant 5.000000e-01 : f32
    %51 = vector.broadcast %cst_28 : f32 to vector<2x2x128xf32>
    %52 = arith.cmpf ogt, %13, %51 : vector<2x2x128xf32>
    %53 = arith.extui %52 : vector<2x2x128xi1> to vector<2x2x128xi32>
    %54 = arith.sitofp %53 : vector<2x2x128xi32> to vector<2x2x128xf32>
    %55 = arith.subf %8, %14 : vector<2x4x2x128xf32>
    %56 = arith.mulf %55, %25 : vector<2x4x2x128xf32>
    %cst_29 = arith.constant 5.000000e-01 : f32
    %57 = vector.broadcast %cst_29 : f32 to vector<2x4x2x128xf32>
    %58 = arith.mulf %57, %56 : vector<2x4x2x128xf32>
    %59 = arith.mulf %58, %56 : vector<2x4x2x128xf32>
    %60 = arith.addf %59, %28 : vector<2x4x2x128xf32>
    %cst_30 = arith.constant 0.918938517 : f32
    %61 = vector.broadcast %cst_30 : f32 to vector<2x4x2x128xf32>
    %62 = arith.addf %60, %61 : vector<2x4x2x128xf32>
    %cst_31 = arith.constant dense<0.000000e+00> : vector<2x2x128xf32>
    %63 = vector.multi_reduction <add>, %62, %cst_31 [1] : vector<2x4x2x128xf32> to vector<2x2x128xf32>
    %64 = arith.mulf %63, %54 : vector<2x2x128xf32>
    %65 = arith.subf %11, %16 : vector<2x2x128xf32>
    %66 = arith.mulf %65, %65 : vector<2x2x128xf32>
    %67 = arith.addf %50, %64 : vector<2x2x128xf32>
    %cst_32 = arith.constant 1.000000e+00 : f32
    %68 = vector.broadcast %cst_32 : f32 to vector<2x2x128xf32>
    %69 = arith.mulf %68, %67 : vector<2x2x128xf32>
    %cst_33 = arith.constant 1.000000e+00 : f32
    %70 = vector.broadcast %cst_33 : f32 to vector<2x2x128xf32>
    %71 = arith.mulf %70, %66 : vector<2x2x128xf32>
    %72 = arith.addf %69, %71 : vector<2x2x128xf32>
    %c0_34 = arith.constant 0 : index
    %c0_35 = arith.constant 0 : index
    %c0_36 = arith.constant 0 : index
    %73 = vector.load %arg7[%c0_34, %c0_35, %c0_36] : memref<2x2x128xf32, #tpu.memory_space<vmem>>, vector<2x2x128xf32>
    %74 = arith.addf %73, %72 : vector<2x2x128xf32>
    %c0_37 = arith.constant 0 : index
    %c0_38 = arith.constant 0 : index
    %c0_39 = arith.constant 0 : index
    %75 = vector.load %arg7[%c0_37, %c0_38, %c0_39] : memref<2x2x128xf32, #tpu.memory_space<vmem>>, vector<2x2x128xf32>
    tpu.vector_store %arg7[%c0_37, %c0_38, %c0_39], %74 {strides = array<i32>} : memref<2x2x128xf32, #tpu.memory_space<vmem>>, vector<2x2x128xf32>,
    %c0_i32_40 = arith.constant 0 : i32
    %76 = arith.cmpi eq, %arg1, %c0_i32_40 : i32
    %77 = arith.extui %76 : i1 to i32
    %c0_i32_41 = arith.constant 0 : i32
    %78 = arith.cmpi ne, %77, %c0_i32_41 : i32
    scf.if %78 {
      %c0_42 = arith.constant 0 : index
      %c0_43 = arith.constant 0 : index
      %c0_44 = arith.constant 0 : index
      %79 = vector.load %arg7[%c0_42, %c0_43, %c0_44] : memref<2x2x128xf32, #tpu.memory_space<vmem>>, vector<2x2x128xf32>
      %80 = vector.shape_cast %79 : vector<2x2x128xf32> to vector<1x2x2x128xf32>
      %cst_45 = arith.constant dense<0.000000e+00> : vector<1xf32>
      %81 = vector.multi_reduction <add>, %80, %cst_45 [1, 2, 3] : vector<1x2x2x128xf32> to vector<1xf32>
      %82 = vector.shape_cast %81 : vector<1xf32> to vector<1x1x1x1xf32>
      %83 = vector.extract %82[0, 0, 0, 0] : f32 from vector<1x1x1x1xf32>
      %cst_46 = arith.constant 0.001953125 : f32
      %84 = arith.mulf %83, %cst_46 : f32
      %c0_47 = arith.constant 0 : index
      %c0_48 = arith.constant 0 : index
      %85 = memref.load %arg6[%c0_47, %c0_48] : memref<1x1xf32, #tpu.memory_space<smem>>
      memref.store %84, %arg6[%c0_47, %c0_48] : memref<1x1xf32, #tpu.memory_space<smem>>
    } else {
    }
    return
  }
  func.func @transform_0(%arg0: i32, %arg1: i32) -> (i32, i32, i32, i32) {
    %c1_i32 = arith.constant 1 : i32
    %0 = arith.muli %arg0, %c1_i32 : i32
    %1 = arith.addi %0, %arg1 : i32
    %c0_i32 = arith.constant 0 : i32
    %c0_i32_0 = arith.constant 0 : i32
    %c0_i32_1 = arith.constant 0 : i32
    %c0_i32_2 = arith.constant 0 : i32
    return %c0_i32, %c0_i32_0, %1, %c0_i32_1 : i32, i32, i32, i32
  }
  func.func @transform_1(%arg0: i32, %arg1: i32) -> (i32, i32, i32, i32) {
    %c1_i32 = arith.constant 1 : i32
    %0 = arith.muli %arg0, %c1_i32 : i32
    %1 = arith.addi %0, %arg1 : i32
    %c0_i32 = arith.constant 0 : i32
    %c1_i32_0 = arith.constant 1 : i32
    %c0_i32_1 = arith.constant 0 : i32
    %c0_i32_2 = arith.constant 0 : i32
    return %c0_i32, %c1_i32_0, %1, %c0_i32_1 : i32, i32, i32, i32
  }
  func.func @transform_2(%arg0: i32, %arg1: i32) -> (i32, i32, i32, i32) {
    %c1_i32 = arith.constant 1 : i32
    %0 = arith.muli %arg0, %c1_i32 : i32
    %1 = arith.addi %0, %arg1 : i32
    %c0_i32 = arith.constant 0 : i32
    %c0_i32_0 = arith.constant 0 : i32
    %c0_i32_1 = arith.constant 0 : i32
    %c0_i32_2 = arith.constant 0 : i32
    return %c0_i32, %c0_i32_0, %1, %c0_i32_1 : i32, i32, i32, i32
  }
  func.func @transform_3(%arg0: i32, %arg1: i32) -> (i32, i32, i32, i32) {
    %c1_i32 = arith.constant 1 : i32
    %0 = arith.muli %arg0, %c1_i32 : i32
    %1 = arith.addi %0, %arg1 : i32
    %c0_i32 = arith.constant 0 : i32
    %c9_i32 = arith.constant 9 : i32
    %c0_i32_0 = arith.constant 0 : i32
    %c0_i32_1 = arith.constant 0 : i32
    return %c0_i32, %c9_i32, %1, %c0_i32_0 : i32, i32, i32, i32
  }
  func.func @transform_4(%arg0: i32, %arg1: i32) -> (i32, i32) {
    %c0_i32 = arith.constant 0 : i32
    %c0_i32_0 = arith.constant 0 : i32
    return %arg0, %c0_i32 : i32, i32
  }
}

</mosaic_0001>

<bundles_post_ra>
// kernel: tpu_custom_call.1
= control target key start
LH: loop header
LB: loop body
LE: loop exit
PB: predicated region body
PF: predicated region fallthrough
CT: control target
= control target key end

     0   :  { %9 = vsyncpa [#allocation4], 0  ;;  %s1120_s0 = inlined_call_operand.hbm [shape: f32[2,10,2,128], index: 0, kind: input, shape index: {}]   ;;  %s1121_s1 = inlined_call_operand.hbm [shape: f32[2,10,2,128], index: 1, kind: input, shape index: {}]   ;;  %s1122_s2 = inlined_call_operand.hbm [shape: f32[2,10,2,128], index: 2, kind: input, shape index: {}]   ;;  %s1123_s3 = inlined_call_operand.hbm [shape: f32[2,10,2,128], index: 3, kind: input, shape index: {}]   ;;  %s1124_s4 = inlined_call_operand.hbm [shape: f32[1,1], index: 4, kind: output, shape index: {}]  }
   0x1   :  { %10 = vsyncpa [#allocation7], 0 }
   0x2   :  { %11 = vsyncpa [#allocation10], 0 }
   0x3   :  { %12 = vsyncpa [#allocation5], 0 }
   0x4   :  { %s24_s15 = sld [smem:[#allocation0]]   ;;  %s32_s18 = sshll.u32 %s1120_s0, 4  ;;  %s33_s18 = int_to_ptr.hbm [resolvable:$true] %s32_s18 }
   0x5   :  { %s723_s19 = smov [#allocation3]   ;;  %s724_s21 = smov 320  }
   0x6   :  { %s34_s20 = sshll.u32 %s723_s19, 4  ;;  %41 = sst [smem:[#allocation13]] %s724_s21  ;;  %s35_s20 = int_to_ptr.vmem [resolvable:$true] %s34_s20 }
   0x7   :  { %s725_s22 = smov 160   ;;  %s726_s24 = smov 5  }
   0x8   :  { %43 = sst [smem:[#allocation13 + $0x1]] %s725_s22  ;;  %s727_s26 = smov 32  }
   0x9   :  { %45 = sst [smem:[#allocation13 + $0x2]] %s726_s24  ;;  %s728_s27 = smov 2  }
   0xa   :  { %s575_s23 = sshll.u32 %s24_s15, 26  ;;  %47 = sst [smem:[#allocation13 + $0x3]] %s727_s26 }
   0xb   :  { %s576_s25 = sadd.s32 134217728, %s575_s23  ;;  %49 = sst [smem:[#allocation13 + $0x4]] %s727_s26 }
   0xc   :  { %51 = sst [smem:[#allocation13 + $0x5]] %s728_s27  ;;  %s729_s28 = smov [#allocation4]  }
   0xd   :  { %s730_s29 = smov [#allocation12]  }
   0xe   :  { %53 = dma.general %s33_s18, 320, %s35_s20, %s729_s28, %s730_s29, [#allocation13], %s576_s25, 0  }
   0xf   :  { %s573_s5 = scalar_lea.hbm %s1121_s1, 10  ;;  %s66_s6 = sld [smem:[#allocation0]]  }
  0x10   :  { %s74_s7 = sshll.u32 %s573_s5, 4  ;;  %s731_s8 = smov [#allocation6]   ;;  %s75_s7 = int_to_ptr.hbm [resolvable:$true] %s74_s7 }
  0x11   :  { %s76_s9 = sshll.u32 %s731_s8, 4  ;;  %s732_s10 = smov 320   ;;  %s77_s9 = int_to_ptr.vmem [resolvable:$true] %s76_s9 }
  0x12   :  { %83 = sst [smem:[#allocation15]] %s732_s10  ;;  %s733_s11 = smov 160  }
  0x13   :  { %85 = sst [smem:[#allocation15 + $0x1]] %s733_s11  ;;  %s734_s13 = smov 5  }
  0x14   :  { %87 = sst [smem:[#allocation15 + $0x2]] %s734_s13  ;;  %s735_s15 = smov 32  }
  0x15   :  { %s577_s12 = sshll.u32 %s66_s6, 26  ;;  %89 = sst [smem:[#allocation15 + $0x3]] %s735_s15 }
  0x16   :  { %s578_s14 = sadd.s32 134217728, %s577_s12  ;;  %91 = sst [smem:[#allocation15 + $0x4]] %s735_s15 }
  0x17   :  { %s736_s16 = smov 2   ;;  %s737_s1 = smov [#allocation7]  }
  0x18   :  { %93 = sst [smem:[#allocation15 + $0x5]] %s736_s16  ;;  %s738_s17 = smov [#allocation14]  }
  0x19   :  { %95 = dma.general %s75_s7, 320, %s77_s9, %s737_s1, %s738_s17, [#allocation15], %s578_s14, 0  }
  0x1a   :  { %s107_s18 = sld [smem:[#allocation0]]   ;;  %s115_s21 = sshll.u32 %s1122_s2, 4  ;;  %s116_s21 = int_to_ptr.hbm [resolvable:$true] %s115_s21 }
  0x1b   :  { %s739_s22 = smov [#allocation8]   ;;  %s740_s24 = smov 320  }
  0x1c   :  { %s117_s23 = sshll.u32 %s739_s22, 4  ;;  %124 = sst [smem:[#allocation17]] %s740_s24  ;;  %s118_s23 = int_to_ptr.vmem [resolvable:$true] %s117_s23 }
  0x1d   :  { %s741_s25 = smov 160   ;;  %s742_s27 = smov 5  }
  0x1e   :  { %126 = sst [smem:[#allocation17 + $0x1]] %s741_s25  ;;  %s743_s29 = smov 32  }
  0x1f   :  { %128 = sst [smem:[#allocation17 + $0x2]] %s742_s27  ;;  %s744_s0 = smov 2  }
  0x20   :  { %s579_s26 = sshll.u32 %s107_s18, 26  ;;  %130 = sst [smem:[#allocation17 + $0x3]] %s743_s29 }
  0x21   :  { %s580_s28 = sadd.s32 134217728, %s579_s26  ;;  %132 = sst [smem:[#allocation17 + $0x4]] %s743_s29 }
  0x22   :  { %134 = sst [smem:[#allocation17 + $0x5]] %s744_s0  ;;  %s745_s30 = smov [#allocation7]  }
  0x23   :  { %s746_s5 = smov [#allocation16]   ;;  %s574_s7 = scalar_lea.hbm %s1123_s3, 18 }
  0x24   :  { %136 = dma.general %s116_s21, 320, %s118_s23, %s745_s30, %s746_s5, [#allocation17], %s580_s28, 0  }
  0x25   :  { %s145_s8 = sshll.u32 %s574_s7, 4  ;;  %s747_s9 = smov [#allocation9]   ;;  %s146_s8 = int_to_ptr.hbm [resolvable:$true] %s145_s8 }
  0x26   :  { %s147_s10 = sshll.u32 %s747_s9, 4  ;;  %s748_s11 = smov 320   ;;  %s148_s10 = int_to_ptr.vmem [resolvable:$true] %s147_s10 }
  0x27   :  { %s749_s12 = smov 32   ;;  %s750_s13 = smov 2  }
  0x28   :  { %153 = dma.hbm_to_vmem [thread:$0]  %s146_s8, 64, %s148_s10, [#allocation10], %s748_s11, %s749_s12, %s750_s13  }
  0x29   :  { %715 = dma.done.wait [#allocation4], 320  }
  0x2a   :  { %716 = vsyncadd [#allocation4], 4294966976 }
  0x2b   :  { %717 = dma.done.wait [#allocation7], 640  }
  0x2c   :  { %718 = vsyncadd [#allocation7], 4294966656 }
  0x2d   :  { %719 = dma.done.wait [#allocation10], 64  }
  0x2e   :  { %720 = vsyncadd [#allocation10], 4294967232  ;;  %v751_v0 = vmov 0.0   ;;  %v190_v1 = vld [vmem:[#allocation6] sm:$0x3]  ;;  %s560_s15 = sshll.u32 %s1124_s4, 4  ;;  %s561_s15 = int_to_ptr.hbm [resolvable:$true] %s560_s15 }
  0x2f   :  { %178 = vst [vmem:[#allocation2] sm:$0x3] %v751_v0  ;;  %v191_v2 = vld [vmem:[#allocation6 + $0x2] sm:$0x3]  ;;  %v192_v3 = vld [vmem:[#allocation6 + $0x4] sm:$0x3] }
  0x30   :  { %179 = vst [vmem:[#allocation2 + $0x2] sm:$0x3] %v751_v0  ;;  %v193_v4 = vld [vmem:[#allocation6 + $0x6] sm:$0x3]  ;;  %v195_v5 = vld [vmem:[#allocation6 + $0xa] sm:$0x3] }
  0x31   :  { %v196_v6 = vld [vmem:[#allocation6 + $0xc] sm:$0x3]  ;;  %v197_v7 = vld [vmem:[#allocation6 + $0xe] sm:$0x3]  ;;  %v198_v8 = vld [vmem:[#allocation6 + $0x10] sm:$0x3] }
  0x32   :  { %v212_v9 = vmax.f32 %v190_v1, -4.6051702  ;;  %v213_v10 = vmax.f32 %v191_v2, -4.6051702  ;;  %v214_v11 = vmax.f32 %v192_v3, -4.6051702 }
  0x33   :  { %v215_v12 = vmax.f32 %v193_v4, -4.6051702  ;;  %v216_v13 = vmax.f32 %v195_v5, -4.6051702  ;;  %v217_v14 = vmax.f32 %v196_v6, -4.6051702 }
  0x34   :  { %v218_v15 = vmax.f32 %v197_v7, -4.6051702  ;;  %v219_v16 = vmax.f32 %v198_v8, -4.6051702  ;;  %v220_v17 = vmin.f32 %v212_v9, 2.3025851 }
  0x35   :  { %v221_v18 = vmin.f32 %v213_v10, 2.3025851  ;;  %v222_v19 = vmin.f32 %v214_v11, 2.3025851  ;;  %v223_v20 = vmin.f32 %v215_v12, 2.3025851 }
  0x36   :  { %v224_v21 = vmin.f32 %v216_v13, 2.3025851  ;;  %v225_v22 = vmin.f32 %v217_v14, 2.3025851  ;;  %v228_v23 = vmul.f32 1.442695, %v220_v17 }
  0x37   :  { %v230_v24 = vmul.f32 1.442695, %v221_v18  ;;  %v232_v25 = vmul.f32 1.442695, %v222_v19  ;;  %v226_v26 = vmin.f32 %v218_v15, 2.3025851 }
  0x38   :  { %v234_v27 = vmul.f32 1.442695, %v223_v20  ;;  %v227_v28 = vmin.f32 %v219_v16, 2.3025851  ;;  %615 = vpow2.f32 %v228_v23  ;;  %v236_v29 = vmul.f32 1.442695, %v224_v21 }
  0x39   :  { %617 = vpow2.f32 %v230_v24  ;;  %v238_v30 = vmul.f32 1.442695, %v225_v22  ;;  %v180_v31 = vld [vmem:[#allocation3] sm:$0x3]  ;;  %v240_v32 = vmul.f32 1.442695, %v226_v26 }
  0x3a   :  { %619 = vpow2.f32 %v232_v25  ;;  %v242_v33 = vmul.f32 1.442695, %v227_v28  ;;  %v388_v34 = vsub.f32 0.0, %v180_v31  ;;  %v185_v39 = vld [vmem:[#allocation3 + $0xa] sm:$0x3]  ;;  %s752_s17 = smov [#allocation11]  }
  0x3b   :  { %621 = vpow2.f32 %v234_v27  ;;  %v389_v48 = vsub.f32 0.0, %v185_v39  ;;  %v992_v16 = vld [vmem:[#allocation3 + $0x4] sm:$0x3]  ;;  %v203_v26 = vld [vmem:[#allocation8 + $0x6] sm:$0x3] }
  0x3c   :  { %623 = vpow2.f32 %v236_v29  ;;  %v390_v43 = vmul.f32 1.442695, %v388_v34  ;;  %v206_v31 = vld [vmem:[#allocation8 + $0xc] sm:$0x3]  ;;  %v187_v34 = vld [vmem:[#allocation3 + $0xe] sm:$0x3] }
  0x3d   :  { %625 = vpow2.f32 %v238_v30  ;;  %v814_v56 = vmul.f32 1.442695, %v389_v48 }
  0x3e   :  { %v616_v35 = vpop.eup %615  ;;  %627 = vpow2.f32 %v240_v32 }
  0x3f   :  { %v618_v36 = vpop.eup %617  ;;  %v792_v37 = vadd.f32 1e-06, %v616_v35  ;;  %629 = vpow2.f32 %v242_v33 }
  0x40   :  { %v620_v38 = vpop.eup %619  ;;  %v794_v40 = vadd.f32 1e-06, %v618_v36 }
  0x41   :  { %v622_v41 = vpop.eup %621  ;;  %v796_v42 = vadd.f32 1e-06, %v620_v38  ;;  %631 = vrcp.f32 %v792_v37  ;;  %v263_v50 = vand.u32 2147483648, %v792_v37  ;;  %v261_v54 = vand.u32 2147483647, %v792_v37 }
  0x42   :  { %v624_v44 = vpop.eup %623  ;;  %v799_v45 = vadd.f32 1e-06, %v622_v41  ;;  %633 = vrcp.f32 %v794_v40  ;;  %v278_v55 = vand.u32 2147483648, %v794_v40  ;;  %vm257_vm0 = vweird.f32 %v792_v37 }
  0x43   :  { %v626_v46 = vpop.eup %625  ;;  %v802_v47 = vadd.f32 1e-06, %v624_v44  ;;  %635 = vrcp.f32 %v796_v42  ;;  %vm272_vm1 = vweird.f32 %v794_v40  ;;  %v276_v59 = vand.u32 2147483647, %v794_v40  ;;  %v188_v44 = vld [vmem:[#allocation3 + $0x10] sm:$0x3] }
  0x44   :  { %v628_v49 = vpop.eup %627  ;;  %637 = vpow2.f32 %v390_v43  ;;  %v806_v52 = vadd.f32 1e-06, %v626_v46  ;;  %v823_v60 = vor.u32 1.1754944e-38, %v263_v50  ;;  %vm287_vm2 = vweird.f32 %v796_v42  ;;  %v208_v46 = vld [vmem:[#allocation8 + $0x10] sm:$0x3] }
  0x45   :  { %v630_v51 = vpop.eup %629  ;;  %639 = vrcp.f32 %v799_v45  ;;  %v291_v62 = vand.u32 2147483647, %v796_v42  ;;  %v831_v1 = vadd.f32 1e-06, %v628_v49  ;;  %v293_v3 = vand.u32 2147483648, %v796_v42 }
  0x46   :  { %641 = vrcp.f32 %v802_v47  ;;  %v837_v5 = vadd.f32 1e-06, %v630_v51  ;;  %vm839_vm3 = vcmp.eq.f32.partialorder %v261_v54, 8.507059e+37  ;;  %v279_v8 = vor.u32 1.1754944e-38, %v278_v55 }
  0x47   :  { %v809_v53 = vpop.eup %631  ;;  %643 = vrcp.f32 %v806_v52  ;;  %vm302_vm4 = vweird.f32 %v799_v45  ;;  %v306_v12 = vand.u32 2147483647, %v799_v45  ;;  %v308_v13 = vand.u32 2147483648, %v799_v45 }
  0x48   :  { %v816_v57 = vpop.eup %633  ;;  %v253_v58 = vmul.f32 %v809_v53, %v792_v37  ;;  %vm258_vm5 = vweird.f32 %v809_v53  ;;  %vm855_vm6 = vcmp.eq.f32.partialorder %v276_v59, 8.507059e+37  ;;  %vm859_vm7 = vcmp.eq.f32.partialorder %v291_v62, 8.507059e+37 }
  0x49   :  { %v268_v61 = vmul.f32 %v816_v57, %v794_v40  ;;  %v829_v63 = vpop.eup %635  ;;  %vm273_vm8 = vweird.f32 %v816_v57  ;;  %v294_v20 = vor.u32 1.1754944e-38, %v293_v3  ;;  %vm317_vm9 = vweird.f32 %v802_v47  ;;  %vm878_vm11 = vmor %vm257_vm0, %vm258_vm5 }
  0x4a   :  { %v254_v2 = vsub.f32 1.0, %v253_v58  ;;  %v835_v4 = vpop.eup %637  ;;  %v283_v9 = vmul.f32 %v829_v63, %v796_v42  ;;  %vm288_vm10 = vweird.f32 %v829_v63  ;;  %vm882_vm12 = vcmp.eq.f32.partialorder %v306_v12, 8.507059e+37  ;;  %vm893_vm13 = vmor %vm272_vm1, %vm273_vm8 }
  0x4b   :  { %v269_v7 = vsub.f32 1.0, %v268_v61  ;;  %v845_v10 = vpop.eup %639  ;;  %v321_v29 = vand.u32 2147483647, %v802_v47  ;;  %645 = vrcp.f32 %v831_v1  ;;  %vm902_vm15 = vmor %vm287_vm2, %vm288_vm10  ;;  %v309_v35 = vor.u32 1.1754944e-38, %v308_v13 }
  0x4c   :  { %v255_v11 = vmul.f32 %v809_v53, %v254_v2  ;;  %v851_v14 = vpop.eup %641  ;;  %v284_v17 = vsub.f32 1.0, %v283_v9  ;;  %v298_v19 = vmul.f32 %v845_v10, %v799_v45  ;;  %vm303_vm14 = vweird.f32 %v845_v10 }
  0x4d   :  { %v270_v15 = vmul.f32 %v816_v57, %v269_v7  ;;  %v313_v21 = vmul.f32 %v851_v14, %v802_v47  ;;  %v872_v25 = vpop.eup %643  ;;  %v323_v38 = vand.u32 2147483648, %v802_v47  ;;  %vm318_vm0 = vweird.f32 %v851_v14  ;;  %vm918_vm2 = vmor %vm302_vm4, %vm303_vm14 }
  0x4e   :  { %v256_v22 = vadd.f32 %v809_v53, %v255_v11  ;;  %v285_v23 = vmul.f32 %v829_v63, %v284_v17  ;;  %v299_v24 = vsub.f32 1.0, %v298_v19  ;;  %v328_v39 = vmul.f32 %v872_v25, %v806_v52  ;;  %vm945_vm4 = vmor %vm317_vm9, %vm318_vm0  ;;  %v183_v19 = vld [vmem:[#allocation3 + $0x6] sm:$0x3] }
  0x4f   :  { %v314_v28 = vsub.f32 1.0, %v313_v21  ;;  %v271_v30 = vadd.f32 %v816_v57, %v270_v15  ;;  %vm332_vm1 = vweird.f32 %v806_v52  ;;  %vm922_vm5 = vcmp.eq.f32.partialorder %v321_v29, 8.507059e+37  ;;  %v186_v21 = vld [vmem:[#allocation3 + $0xc] sm:$0x3] }
  0x50   :  { %v286_v32 = vadd.f32 %v829_v63, %v285_v23  ;;  %v300_v33 = vmul.f32 %v845_v10, %v299_v24  ;;  %v260_v41 = vsel %vm878_vm11, %v809_v53, %v256_v22  ;;  %v329_v48 = vsub.f32 1.0, %v328_v39  ;;  %v201_v22 = vld [vmem:[#allocation8 + $0x2] sm:$0x3]  ;;  %v202_v23 = vld [vmem:[#allocation8 + $0x4] sm:$0x3] }
  0x51   :  { %v315_v36 = vmul.f32 %v851_v14, %v314_v28  ;;  %v336_v49 = vand.u32 2147483647, %v806_v52  ;;  %v338_v50 = vand.u32 2147483648, %v806_v52  ;;  %v275_v51 = vsel %vm893_vm13, %v816_v57, %v271_v30  ;;  %v936_v55 = vpop.eup %645  ;;  %v204_v30 = vld [vmem:[#allocation8 + $0x8] sm:$0x3] }
  0x52   :  { %v301_v43 = vadd.f32 %v845_v10, %v300_v33  ;;  %v290_v53 = vsel %vm902_vm15, %v829_v63, %v286_v32  ;;  %647 = vrcp.f32 %v837_v5  ;;  %v941_v58 = vsel %vm839_vm3, %v823_v60, %v260_v41 }
  0x53   :  { %v316_v54 = vadd.f32 %v851_v14, %v315_v36  ;;  %v324_v57 = vor.u32 1.1754944e-38, %v323_v38  ;;  %vm347_vm8 = vweird.f32 %v831_v1  ;;  %v351_v61 = vand.u32 2147483647, %v831_v1 }
  0x54   :  { %v305_v62 = vsel %vm918_vm2, %v845_v10, %v301_v43  ;;  %v330_v63 = vmul.f32 %v872_v25, %v329_v48  ;;  %v343_v60 = vmul.f32 %v936_v55, %v831_v1  ;;  %v353_v2 = vand.u32 2147483648, %v831_v1 }
  0x55   :  { %v960_v3 = vsel %vm855_vm6, %v279_v8, %v275_v51  ;;  %v964_v6 = vsel %vm859_vm7, %v294_v20, %v290_v53  ;;  %vm333_vm3 = vweird.f32 %v872_v25  ;;  %vm967_vm9 = vcmp.eq.f32.partialorder %v336_v49, 8.507059e+37  ;;  %v184_v20 = vld [vmem:[#allocation3 + $0x8] sm:$0x3] }
  0x56   :  { %v971_v9 = vor.u32 1.1754944e-38, %v338_v50  ;;  %v320_v10 = vsel %vm945_vm4, %v851_v14, %v316_v54  ;;  %v344_v11 = vsub.f32 1.0, %v343_v60  ;;  %v366_v8 = vand.u32 2147483647, %v837_v5  ;;  %v990_v14 = vld [vmem:[#allocation3 + $0x2] sm:$0x3]  ;;  %vm1005_vm10 = vmor %vm332_vm1, %vm333_vm3 }
  0x57   :  { %649 = vlog2.f32 %v792_v37  ;;  %v980_v12 = vsel %vm882_vm12, %v309_v35, %v305_v62  ;;  %vm982_vm6 = vcmp.eq.f32.partialorder %v351_v61, 8.507059e+37  ;;  %vm362_vm7 = vweird.f32 %v837_v5  ;;  %v207_v35 = vld [vmem:[#allocation8 + $0xe] sm:$0x3]  ;;  %v189_v60 = vld [vmem:[#allocation3 + $0x12] sm:$0x3] }
  0x58   :  { %651 = vlog2.f32 %v794_v40  ;;  %v988_v15 = vpop.eup %647  ;;  %v331_v37 = vadd.f32 %v872_v25, %v330_v63  ;;  %v345_v17 = vmul.f32 %v936_v55, %v344_v11  ;;  %v996_v18 = vor.u32 1.1754944e-38, %v353_v2  ;;  %v209_v2 = vld [vmem:[#allocation8 + $0x12] sm:$0x3] }
  0x59   :  { %653 = vlog2.f32 %v796_v42  ;;  %v325_v40 = vsel %vm922_vm5, %v324_v57, %v320_v10  ;;  %vm348_vm11 = vweird.f32 %v936_v55  ;;  %v358_v42 = vmul.f32 %v988_v15, %v837_v5 }
  0x5a   :  { %655 = vlog2.f32 %v799_v45  ;;  %vm1013_vm12 = vcmp.eq.f32.partialorder %v366_v8, 8.507059e+37  ;;  %v368_v28 = vand.u32 2147483648, %v837_v5  ;;  %v1020_v29 = vadd.f32 1.0, %v835_v4  ;;  %vm1032_vm14 = vmor %vm347_vm8, %vm348_vm11 }
  0x5b   :  { %657 = vlog2.f32 %v802_v47  ;;  %v346_v32 = vadd.f32 %v936_v55, %v345_v17  ;;  %v359_v33 = vsub.f32 1.0, %v358_v42  ;;  %vm363_vm13 = vweird.f32 %v988_v15 }
  0x5c   :  { %659 = vlog2.f32 %v806_v52  ;;  %v335_v36 = vsel %vm1005_vm10, %v872_v25, %v331_v37  ;;  %v407_v4 = vand.u32 2147483648, %v1020_v29  ;;  %v456_v52 = vsub.f32 %v990_v14, %v201_v22  ;;  %vm1047_vm15 = vmor %vm362_vm7, %vm363_vm13 }
  0x5d   :  { %v650_v45 = vpop.eup %649  ;;  %661 = vlog2.f32 %v831_v1  ;;  %v360_v39 = vmul.f32 %v988_v15, %v359_v33  ;;  %v405_v25 = vand.u32 2147483647, %v1020_v29  ;;  %v457_v41 = vsub.f32 %v992_v16, %v202_v23 }
  0x5e   :  { %v652_v38 = vpop.eup %651  ;;  %663 = vpow2.f32 %v814_v56  ;;  %v458_v48 = vsub.f32 %v183_v19, %v203_v26  ;;  %v459_v49 = vsub.f32 %v184_v20, %v204_v30  ;;  %v460_v56 = vsub.f32 %v186_v21, %v206_v31 }
  0x5f   :  { %v654_v43 = vpop.eup %653  ;;  %665 = vrcp.f32 %v1020_v29  ;;  %v350_v51 = vsel %vm1032_vm14, %v936_v55, %v346_v32  ;;  %v361_v53 = vadd.f32 %v988_v15, %v360_v39  ;;  %v461_v54 = vsub.f32 %v187_v34, %v207_v35 }
  0x60   :  { %v656_v50 = vpop.eup %655  ;;  %667 = vlog2.f32 %v837_v5  ;;  %v340_v57 = vsel %vm967_vm9, %v971_v9, %v335_v36  ;;  %v369_v61 = vor.u32 1.1754944e-38, %v368_v28  ;;  %vm401_vm0 = vweird.f32 %v1020_v29 }
  0x61   :  { %v658_v59 = vpop.eup %657  ;;  %v1061_v62 = vor.u32 1.1754944e-38, %v407_v4  ;;  %v365_v55 = vsel %vm1047_vm15, %v988_v15, %v361_v53  ;;  %v462_v10 = vsub.f32 %v188_v44, %v208_v46  ;;  %v464_v5 = vmul.f32 %v456_v52, %v941_v58 }
  0x62   :  { %v660_v63 = vpop.eup %659  ;;  %v465_v11 = vmul.f32 %v457_v41, %v960_v3  ;;  %v355_v7 = vsel %vm982_vm6, %v996_v18, %v350_v51  ;;  %v466_v9 = vmul.f32 %v458_v48, %v964_v6  ;;  %v467_v14 = vmul.f32 %v459_v49, %v980_v12 }
  0x63   :  { %v662_v8 = vpop.eup %661  ;;  %v468_v16 = vmul.f32 %v460_v56, %v325_v40  ;;  %v373_v17 = vmul.f32 0.6931472, %v650_v45  ;;  %v375_v19 = vmul.f32 0.6931472, %v652_v38  ;;  %v377_v20 = vmul.f32 0.6931472, %v654_v43 }
  0x64   :  { %v664_v37 = vpop.eup %663  ;;  %vm1073_vm1 = vcmp.eq.f32.partialorder %v405_v25, 8.507059e+37  ;;  %v469_v58 = vmul.f32 %v461_v54, %v340_v57  ;;  %v370_v21 = vsel %vm1013_vm12, %v369_v61, %v365_v55  ;;  %v379_v13 = vmul.f32 0.6931472, %v656_v50  ;;  %v529_v55 = vld [vmem:[#allocation2] sm:$0x3] }
  0x65   :  { %v666_v3 = vpop.eup %665  ;;  %v395_v18 = vadd.f32 1.0, %v664_v37  ;;  %v463_v22 = vsub.f32 %v189_v60, %v209_v2  ;;  %v470_v23 = vmul.f32 %v462_v10, %v355_v7  ;;  %v472_v40 = vmul.f32 0.5, %v464_v5 }
  0x66   :  { %v668_v6 = vpop.eup %667  ;;  %v397_v12 = vmul.f32 %v666_v3, %v1020_v29  ;;  %v473_v24 = vmul.f32 0.5, %v465_v11  ;;  %v474_v42 = vmul.f32 0.5, %v466_v9  ;;  %v475_v26 = vmul.f32 0.5, %v467_v14 }
  0x67   :  { %669 = vrcp.f32 %v395_v18  ;;  %v476_v28 = vmul.f32 0.5, %v468_v16  ;;  %v381_v30 = vmul.f32 0.6931472, %v658_v59  ;;  %vm402_vm2 = vweird.f32 %v666_v3 }
  0x68   :  { %v398_v31 = vsub.f32 1.0, %v397_v12  ;;  %v477_v32 = vmul.f32 0.5, %v469_v58  ;;  %v383_v33 = vmul.f32 0.6931472, %v660_v63  ;;  %v385_v27 = vmul.f32 0.6931472, %v662_v8  ;;  %vm1082_vm4 = vmor %vm401_vm0, %vm402_vm2 }
  0x69   :  { %v387_v45 = vmul.f32 0.6931472, %v668_v6  ;;  %v471_v34 = vmul.f32 %v463_v22, %v370_v21  ;;  %vm416_vm5 = vweird.f32 %v395_v18  ;;  %v478_v36 = vmul.f32 0.5, %v470_v23  ;;  %v200_v21 = vld [vmem:[#allocation8] sm:$0x3] }
  0x6a   :  { %v399_v35 = vmul.f32 %v666_v3, %v398_v31  ;;  %v480_v47 = vmul.f32 %v472_v40, %v464_v5  ;;  %v481_v52 = vmul.f32 %v473_v24, %v465_v11  ;;  %v482_v38 = vmul.f32 %v474_v42, %v466_v9 }
  0x6b   :  { %v483_v39 = vmul.f32 %v475_v26, %v467_v14  ;;  %v484_v25 = vmul.f32 %v476_v28, %v468_v16  ;;  %v420_v43 = vand.u32 2147483647, %v395_v18  ;;  %v422_v44 = vand.u32 2147483648, %v395_v18 }
  0x6c   :  { %v400_v41 = vadd.f32 %v666_v3, %v399_v35  ;;  %v485_v46 = vmul.f32 %v477_v32, %v469_v58  ;;  %v479_v48 = vmul.f32 0.5, %v471_v34  ;;  %v488_v49 = vadd.f32 %v480_v47, %v373_v17 }
  0x6d   :  { %v670_v1 = vpop.eup %669  ;;  %v489_v56 = vadd.f32 %v481_v52, %v375_v19  ;;  %v490_v50 = vadd.f32 %v482_v38, %v377_v20  ;;  %v486_v53 = vmul.f32 %v478_v36, %v470_v23  ;;  %v491_v54 = vadd.f32 %v483_v39, %v379_v13  ;;  %v205_v38 = vld [vmem:[#allocation8 + $0xa] sm:$0x3] }
  0x6e   :  { %v404_v29 = vsel %vm1082_vm4, %v666_v3, %v400_v41  ;;  %v412_v51 = vmul.f32 %v670_v1, %v395_v18  ;;  %vm417_vm8 = vweird.f32 %v670_v1  ;;  %v492_v57 = vadd.f32 %v484_v25, %v381_v30 }
  0x6f   :  { %v409_v59 = vsel %vm1073_vm1, %v1061_v62, %v404_v29  ;;  %v493_v61 = vadd.f32 %v485_v46, %v383_v33  ;;  %v496_v2 = vadd.f32 0.9189385, %v488_v49  ;;  %vm1091_vm3 = vcmp.eq.f32.partialorder %v420_v43, 8.507059e+37  ;;  %vm1097_vm9 = vmor %vm416_vm5, %vm417_vm8  ;;  %v194_v33 = vld [vmem:[#allocation6 + $0x8] sm:$0x3] }
  0x70   :  { %v413_v63 = vsub.f32 1.0, %v412_v51  ;;  %671 = vlog2.f32 %v409_v59  ;;  %v436_v60 = vsub.f32 1.0, %v409_v59  ;;  %v487_v10 = vmul.f32 %v479_v48, %v471_v34  ;;  %v211_v59 = vld [vmem:[#allocation9 + $0x2] sm:$0x3] }
  0x71   :  { %v497_v5 = vadd.f32 0.9189385, %v489_v56  ;;  %v498_v11 = vadd.f32 0.9189385, %v490_v50  ;;  %v494_v7 = vadd.f32 %v486_v53, %v385_v27  ;;  %v499_v9 = vadd.f32 0.9189385, %v491_v54 }
  0x72   :  { %v414_v8 = vmul.f32 %v670_v1, %v413_v63  ;;  %673 = vlog2.f32 %v436_v60  ;;  %v423_v14 = vor.u32 1.1754944e-38, %v422_v44  ;;  %v500_v16 = vadd.f32 0.9189385, %v492_v57  ;;  %v210_v27 = vld [vmem:[#allocation9] sm:$0x3] }
  0x73   :  { %v501_v37 = vadd.f32 0.9189385, %v493_v61  ;;  %vm504_vm6 = vcmask 1041408   ;;  %v495_v18 = vadd.f32 %v487_v10, %v387_v45  ;;  %v502_v22 = vadd.f32 0.9189385, %v494_v7 }
  0x74   :  { %v415_v17 = vadd.f32 %v670_v1, %v414_v8  ;;  %v505_v19 = vsel %vm504_vm6, %v496_v2, 0.0  ;;  %v506_v20 = vsel %vm504_vm6, %v497_v5, 0.0  ;;  %v508_v15 = vsel %vm504_vm6, %v498_v11, 0.0  ;;  %v199_v54 = vld [vmem:[#allocation6 + $0x12] sm:$0x3] }
  0x75   :  { %v507_v58 = vadd.f32 %v506_v20, %v505_v19  ;;  %v510_v40 = vsel %vm504_vm6, %v499_v9, 0.0  ;;  %v512_v26 = vsel %vm504_vm6, %v500_v16, 0.0  ;;  %v513_v28 = vsel %vm504_vm6, %v501_v37, 0.0  ;;  %v530_v37 = vld [vmem:[#allocation2 + $0x2] sm:$0x3] }
  0x76   :  { %v672_v3 = vpop.eup %671  ;;  %v419_v13 = vsel %vm1097_vm9, %v670_v1, %v415_v17  ;;  %v434_v31 = vsub.f32 1.0, %v200_v21  ;;  %vm450_vm7 = vcmp.gt.f32.partialorder %v200_v21, 0.5  ;;  %v514_v36 = vadd.f32 %v513_v28, %v512_v26 }
  0x77   :  { %v424_v6 = vsel %vm1091_vm3, %v423_v14, %v419_v13  ;;  %v427_v12 = vmul.f32 0.6931472, %v672_v3  ;;  %v509_v23 = vadd.f32 %v508_v15, %v507_v58  ;;  %v581_v47 = vsel %vm450_vm7, 1.0, %v751_v0 }
  0x78   :  { %v674_v24 = vpop.eup %673  ;;  %675 = vlog2.f32 %v424_v6  ;;  %v437_v42 = vsub.f32 1.0, %v424_v6  ;;  %v503_v4 = vadd.f32 0.9189385, %v495_v18  ;;  %v515_v52 = vsel %vm504_vm6, %v502_v22, 0.0 }
  0x79   :  { %v430_v30 = vmax.f32 %v427_v12, -100.0  ;;  %v439_v32 = vmul.f32 0.6931472, %v674_v24  ;;  %v511_v35 = vadd.f32 %v510_v40, %v509_v23  ;;  %v521_v25 = vsub.f32 %v194_v33, %v210_v27 }
  0x7a   :  { %677 = vlog2.f32 %v437_v42  ;;  %v516_v46 = vadd.f32 %v515_v52, %v514_v36  ;;  %v435_v49 = vsub.f32 1.0, %v205_v38  ;;  %vm451_vm10 = vcmp.gt.f32.partialorder %v205_v38, 0.5 }
  0x7b   :  { %v432_v45 = vmul.f32 %v430_v30, %v200_v21  ;;  %v442_v34 = vmax.f32 %v439_v32, -100.0  ;;  %v519_v1 = vmul.f32 %v581_v47, %v511_v35  ;;  %v517_v56 = vsel %vm504_vm6, %v503_v4, 0.0 }
  0x7c   :  { %v523_v53 = vmul.f32 %v521_v25, %v521_v25  ;;  %v518_v63 = vadd.f32 %v517_v56, %v516_v46  ;;  %v582_v2 = vsel %vm451_vm10, 1.0, %v751_v0  ;;  %v522_v5 = vsub.f32 %v199_v54, %v211_v59 }
  0x7d   :  { %v444_v39 = vmul.f32 %v442_v34, %v434_v31 }
  0x7e   :  { %v676_v41 = vpop.eup %675  ;;  %v520_v7 = vmul.f32 %v582_v2, %v518_v63  ;;  %v524_v14 = vmul.f32 %v522_v5, %v522_v5 }
  0x7f   :  { %v429_v43 = vmul.f32 0.6931472, %v676_v41  ;;  %v446_v44 = vadd.f32 %v444_v39, %v432_v45 }
  0x80   :  { %v678_v48 = vpop.eup %677 }
  0x81   :  { %v431_v50 = vmax.f32 %v429_v43, -100.0  ;;  %v441_v29 = vmul.f32 0.6931472, %v678_v48  ;;  %v448_v51 = vsub.f32 0.0, %v446_v44 }
  0x83   :  { %v433_v57 = vmul.f32 %v431_v50, %v205_v38  ;;  %v443_v61 = vmax.f32 %v441_v29, -100.0  ;;  %v525_v60 = vadd.f32 %v519_v1, %v448_v51 }
  0x85   :  { %v445_v10 = vmul.f32 %v443_v61, %v435_v49  ;;  %v527_v11 = vadd.f32 %v525_v60, %v523_v53 }
  0x87   :  { %v447_v8 = vadd.f32 %v445_v10, %v433_v57  ;;  %v531_v9 = vadd.f32 %v529_v55, %v527_v11 }
  0x89   :  { %v449_v62 = vsub.f32 0.0, %v447_v8  ;;  %533 = vst [vmem:[#allocation2] sm:$0x3] %v531_v9 }
  0x8b   :  { %v526_v16 = vadd.f32 %v520_v7, %v449_v62 }
  0x8d   :  { %v528_v17 = vadd.f32 %v526_v16, %v524_v14 }
  0x8f   :  { %v532_v19 = vadd.f32 %v530_v37, %v528_v17 }
  0x90   :  { %v538_v20 = vld [vmem:[#allocation2] sm:$0x3] }
  0x91   :  { %534 = vst [vmem:[#allocation2 + $0x2] sm:$0x3] %v532_v19  ;;  %v540_v15 = vsel %vm504_vm6, %v538_v20, 0.0 }
  0x98   :  { %v539_v58 = vld [vmem:[#allocation2 + $0x2] sm:$0x3] }
  0x99   :  { %v541_v0 = vsel %vm504_vm6, %v539_v58, 0.0 }
  0x9a   :  { %v542_v3 = vadd.f32 %v541_v0, %v540_v15 }
  0x9c   :  { %543 = vadd.xlane.f32.xlu0 %v542_v3 }
 0x10f   :  { %v544_v21 = vpop.xlane.xlu0 %543 }
 0x110   :  { %v545_v13 = vrot.slane %v544_v21, 4 }
 0x112   :  { %v546_v18 = vadd.f32 %v545_v13, %v544_v21 }
 0x114   :  { %v547_v22 = vrot.slane %v546_v18, 2 }
 0x116   :  { %v548_v6 = vadd.f32 %v547_v22, %v546_v18 }
 0x118   :  { %v549_v12 = vrot.slane %v548_v6, 1 }
 0x11a   :  { %v550_v23 = vadd.f32 %v549_v12, %v548_v6 }
 0x11c   :  { %583 = vpush %v550_v23 }
 0x14d   :  { %s584_s16 = spop %583 }
 0x14e   :  { %s552_s1 = smul.f32 0.001953125, %s584_s16 }
 0x150   :  { %554 = sst [smem:[#allocation11]] %s552_s1 }
 0x151   :  { %563 = dma.smem_to_hbm %s752_s17, 16, %s561_s15, [#allocation5]  }
 0x152   :  { %721 = dma.done.wait [#allocation5], 16  }
 0x153   :  { %722 = vsyncadd [#allocation5], 4294967280 }
 0x154   :  { %568 = sfence }
 0x155   :  { %569 = vsyncpa [#allocation4], 1 }
 0x156   :  { %570 = vsyncpa [#allocation7], 1 }
 0x157   :  { %571 = vsyncpa [#allocation10], 1 }
 0x158   :  { %572 = vsyncpa [#allocation5], 1 }

</bundles_post_ra>
